<compile_context>
chip_gen: v5e
topology: v5e:2x2
jax: 0.10.0
libtpu: 0.0.40
codegen_flags: <defaults>
</compile_context>

<pallas_src>
import jax
import jax.numpy as jnp
from jax import lax
from jax.experimental import pallas as pl
from jax.experimental.pallas import tpu as pltpu


D_IN, D_H1, D_H2, D_OUT = 3, 10, 3, 2

LANES = 256        # lane width of the dense batch layout (multiple of 128)
CHUNK_ROWS = 8     # sublane rows processed per inner-loop iteration
TILE_UNIT = CHUNK_ROWS * LANES   # 2048 batch elements: minimum tile granule


def _round_up(n, m):
    return ((n + m - 1) // m) * m


def _affine(rows_in, w_ref, b_ref, n_out, n_in, relu):
    """rows_in: list of n_in dense (CHUNK_ROWS, LANES) arrays (batch on
    sublanes x lanes).  w_ref: SMEM (n_out, n_in), b_ref: SMEM (n_out,).
    Fully unrolled scalar-broadcast multiply-adds on the VPU."""
    rows_out = []
    for j in range(n_out):
        acc = rows_in[0] * w_ref[j, 0] + b_ref[j]
        for k in range(1, n_in):
            acc = acc + rows_in[k] * w_ref[j, k]
        if relu:
            acc = jnp.maximum(acc, 0.0)
        rows_out.append(acc)
    return rows_out


def neuron_bayes_kernel(w1_ref, b1_ref, w2_ref, b2_ref, w3_ref, b3_ref,
                        x_ref, out_ref):
    # x_ref: (3, TR, LANES) f32 in VMEM; out_ref: (2, TR, LANES) f32.
    tr = x_ref.shape[1]
    n_chunks = tr // CHUNK_ROWS   # static

    def body(c, carry):
        r0 = pl.multiple_of(c * CHUNK_ROWS, CHUNK_ROWS)

        xs = [x_ref[k, pl.ds(r0, CHUNK_ROWS), :] for k in range(D_IN)]
        h1 = _affine(xs, w1_ref, b1_ref, D_H1, D_IN, relu=True)    # 10 rows
        h2 = _affine(h1, w2_ref, b2_ref, D_H2, D_H1, relu=True)    # 3 rows
        lg = _affine(h2, w3_ref, b3_ref, D_OUT, D_H2, relu=False)  # 2 rows

        # 2-class softmax via the logistic identity (numerically stable):
        #   p0 = sigmoid(lg0 - lg1), p1 = 1 - p0.
        d = lg[0] - lg[1]
        e = jnp.exp(-jnp.abs(d))                  # in (0, 1]; EUP
        s = 1.0 + e
        inv = pl.reciprocal(s, approx=True)       # EUP approx
        inv = inv * (2.0 - s * inv)               # one Newton step (~1e-7 rel)
        p_hi = inv                                # prob of the larger logit
        p_lo = e * inv
        pos = d >= 0.0
        out_ref[0, pl.ds(r0, CHUNK_ROWS), :] = jnp.where(pos, p_hi, p_lo)
        out_ref[1, pl.ds(r0, CHUNK_ROWS), :] = jnp.where(pos, p_lo, p_hi)
        return carry

    lax.fori_loop(0, n_chunks, body, 0)


def neuron_bayes_forward(x, params, *, block_batch=65536):
    """x: (B, 3) float32.  params in torch.nn.Linear layout:
    w1 (10,3), b1 (10,), w2 (3,10), b2 (3,), w3 (2,3), b3 (2,).
    Returns (B, 2) softmax probabilities."""
    B = x.shape[0]

    # Tile size in batch elements: multiple of the (8, 256) granule, capped by
    # block_batch.  ~20 B/elem double-buffered -> a 64K tile is ~2.5 MiB VMEM.
    block_batch = _round_up(max(block_batch, TILE_UNIT), TILE_UNIT)
    tile_elems = min(block_batch, _round_up(B, TILE_UNIT))
    b_pad = _round_up(B, tile_elems)
    n_rows = b_pad // LANES
    tr = tile_elems // LANES
    grid = b_pad // tile_elems

    # Sublane/lane-dense layout: (B,3) -> (3, B_pad) -> (3, R, LANES).
    # TODO(synk): for very large B on v5e, accept feature-major input to avoid
    # the wrapper transpose's extra HBM pass.
    xt = jnp.transpose(x.astype(jnp.float32))            # (3, B)
    xt = jnp.pad(xt, ((0, 0), (0, b_pad - B)))           # (3, B_pad)
    xt = xt.reshape(D_IN, n_rows, LANES)                 # (3, R, LANES)

    smem_spec = pl.BlockSpec(memory_space=pltpu.MemorySpace.SMEM)

    out = pl.pallas_call(
        neuron_bayes_kernel,
        out_shape=jax.ShapeDtypeStruct((D_OUT, n_rows, LANES), jnp.float32),
        grid=(grid,),
        in_specs=[
            smem_spec,  # w1 (10, 3)
            smem_spec,  # b1 (10,)
            smem_spec,  # w2 (3, 10)
            smem_spec,  # b2 (3,)
            smem_spec,  # w3 (2, 3)
            smem_spec,  # b3 (2,)
            pl.BlockSpec((D_IN, tr, LANES), lambda i: (0, i, 0)),
        ],
        out_specs=pl.BlockSpec((D_OUT, tr, LANES), lambda i: (0, i, 0)),
        compiler_params=pltpu.CompilerParams(
            dimension_semantics=("parallel",)),
    )(params["w1"], params["b1"], params["w2"], params["b2"],
      params["w3"], params["b3"], xt)

    out = out.reshape(D_OUT, b_pad)[:, :B]                # (2, B)
    return jnp.transpose(out)                             # (B, 2)


def init_params(key):
    """Deterministic init mimicking torch.nn.Linear: U(-1/sqrt(fan_in), +...).
    Weights kept in PyTorch layout (out, in); biases (out,)."""
    ks = jax.random.split(key, 6)

    def linear(kw, kb, fan_in, fan_out):
        bound = 1.0 / jnp.sqrt(float(fan_in))
        w = jax.random.uniform(kw, (fan_out, fan_in), jnp.float32,
                               minval=-bound, maxval=bound)
        b = jax.random.uniform(kb, (fan_out,), jnp.float32,
                               minval=-bound, maxval=bound)
        return w, b

    w1, b1 = linear(ks[0], ks[1], D_IN, D_H1)
    w2, b2 = linear(ks[2], ks[3], D_H1, D_H2)
    w3, b3 = linear(ks[4], ks[5], D_H2, D_OUT)
    return {"w1": w1, "b1": b1, "w2": w2, "b2": b2, "w3": w3, "b3": b3}


def reference_forward(x, p):
    h1 = jnp.maximum(x @ p["w1"].T + p["b1"], 0.0)
    h2 = jnp.maximum(h1 @ p["w2"].T + p["b2"], 0.0)
    logits = h2 @ p["w3"].T + p["b3"]
    return jax.nn.softmax(logits, axis=-1)


if __name__ == "__main__":
    key = jax.random.PRNGKey(0)
    pkey, xkey = jax.random.split(key)

    params = init_params(pkey)
    B = 8
    x = jax.random.normal(xkey, (B, D_IN), jnp.float32)

    out = neuron_bayes_forward(x, params)
    out = jax.block_until_ready(out)

    ref = reference_forward(x, params)
    assert out.shape == (B, D_OUT)
    assert jnp.allclose(out, ref, atol=1e-5, rtol=1e-5), "mismatch vs reference"
    assert jnp.allclose(jnp.sum(out, axis=-1), jnp.ones((B,)), atol=1e-5)

    print("KERNEL_OK")
</pallas_src>

<mosaic_0001>
module attributes {stable_mosaic.version = 11 : i64} {
  func.func @neuron_bayes_kernel(%arg0: i32, %arg1: memref<10x3xf32, #tpu.memory_space<smem>>, %arg2: memref<10xf32, #tpu.memory_space<smem>>, %arg3: memref<3x10xf32, #tpu.memory_space<smem>>, %arg4: memref<3xf32, #tpu.memory_space<smem>>, %arg5: memref<2x3xf32, #tpu.memory_space<smem>>, %arg6: memref<2xf32, #tpu.memory_space<smem>>, %arg7: memref<3x8x256xf32, #tpu.memory_space<vmem>>, %arg8: memref<2x8x256xf32, #tpu.memory_space<vmem>>) attributes {dimension_semantics = [#tpu.dimension_semantics<parallel>], iteration_bounds = array<i64: 1>, scalar_prefetch = 0 : i64, scratch_operands = 0 : i64, tpu.core_type = #tpu.core_type<tc>, window_params = [{transform_indices = @transform_0, window_bounds = array<i64: 10, 3>}, {transform_indices = @transform_1, window_bounds = array<i64: 10>}, {transform_indices = @transform_2, window_bounds = array<i64: 3, 10>}, {transform_indices = @transform_3, window_bounds = array<i64: 3>}, {transform_indices = @transform_4, window_bounds = array<i64: 2, 3>}, {transform_indices = @transform_5, window_bounds = array<i64: 2>}, {transform_indices = @transform_6, window_bounds = array<i64: 3, 8, 256>}, {transform_indices = @transform_7, window_bounds = array<i64: 2, 8, 256>}]} {
    %c0_i32 = arith.constant 0 : i32
    %c8_i32 = arith.constant 8 : i32
    %0 = arith.muli %c0_i32, %c8_i32 : i32
    %1 = tpu.assume_multiple %0, 8 : i32
    %c0 = arith.constant 0 : index
    %2 = arith.index_cast %1 : i32 to index
    %c0_0 = arith.constant 0 : index
    %3 = vector.load %arg7[%c0, %2, %c0_0] : memref<3x8x256xf32, #tpu.memory_space<vmem>>, vector<1x8x256xf32>
    %4 = vector.shape_cast %3 : vector<1x8x256xf32> to vector<8x256xf32>
    %c1 = arith.constant 1 : index
    %5 = arith.index_cast %1 : i32 to index
    %c0_1 = arith.constant 0 : index
    %6 = vector.load %arg7[%c1, %5, %c0_1] : memref<3x8x256xf32, #tpu.memory_space<vmem>>, vector<1x8x256xf32>
    %7 = vector.shape_cast %6 : vector<1x8x256xf32> to vector<8x256xf32>
    %c2 = arith.constant 2 : index
    %8 = arith.index_cast %1 : i32 to index
    %c0_2 = arith.constant 0 : index
    %9 = vector.load %arg7[%c2, %8, %c0_2] : memref<3x8x256xf32, #tpu.memory_space<vmem>>, vector<1x8x256xf32>
    %10 = vector.shape_cast %9 : vector<1x8x256xf32> to vector<8x256xf32>
    %c0_3 = arith.constant 0 : index
    %c0_4 = arith.constant 0 : index
    %11 = memref.load %arg1[%c0_3, %c0_4] : memref<10x3xf32, #tpu.memory_space<smem>>
    %12 = vector.broadcast %11 : f32 to vector<8x256xf32>
    %13 = arith.mulf %4, %12 : vector<8x256xf32>
    %c0_5 = arith.constant 0 : index
    %14 = memref.load %arg2[%c0_5] : memref<10xf32, #tpu.memory_space<smem>>
    %15 = vector.broadcast %14 : f32 to vector<8x256xf32>
    %16 = arith.addf %13, %15 : vector<8x256xf32>
    %c0_6 = arith.constant 0 : index
    %c1_7 = arith.constant 1 : index
    %17 = memref.load %arg1[%c0_6, %c1_7] : memref<10x3xf32, #tpu.memory_space<smem>>
    %18 = vector.broadcast %17 : f32 to vector<8x256xf32>
    %19 = arith.mulf %7, %18 : vector<8x256xf32>
    %20 = arith.addf %16, %19 : vector<8x256xf32>
    %c0_8 = arith.constant 0 : index
    %c2_9 = arith.constant 2 : index
    %21 = memref.load %arg1[%c0_8, %c2_9] : memref<10x3xf32, #tpu.memory_space<smem>>
    %22 = vector.broadcast %21 : f32 to vector<8x256xf32>
    %23 = arith.mulf %10, %22 : vector<8x256xf32>
    %24 = arith.addf %20, %23 : vector<8x256xf32>
    %cst = arith.constant 0.000000e+00 : f32
    %25 = vector.broadcast %cst : f32 to vector<8x256xf32>
    %26 = arith.maximumf %24, %25 : vector<8x256xf32>
    %c1_10 = arith.constant 1 : index
    %c0_11 = arith.constant 0 : index
    %27 = memref.load %arg1[%c1_10, %c0_11] : memref<10x3xf32, #tpu.memory_space<smem>>
    %28 = vector.broadcast %27 : f32 to vector<8x256xf32>
    %29 = arith.mulf %4, %28 : vector<8x256xf32>
    %c1_12 = arith.constant 1 : index
    %30 = memref.load %arg2[%c1_12] : memref<10xf32, #tpu.memory_space<smem>>
    %31 = vector.broadcast %30 : f32 to vector<8x256xf32>
    %32 = arith.addf %29, %31 : vector<8x256xf32>
    %c1_13 = arith.constant 1 : index
    %c1_14 = arith.constant 1 : index
    %33 = memref.load %arg1[%c1_13, %c1_14] : memref<10x3xf32, #tpu.memory_space<smem>>
    %34 = vector.broadcast %33 : f32 to vector<8x256xf32>
    %35 = arith.mulf %7, %34 : vector<8x256xf32>
    %36 = arith.addf %32, %35 : vector<8x256xf32>
    %c1_15 = arith.constant 1 : index
    %c2_16 = arith.constant 2 : index
    %37 = memref.load %arg1[%c1_15, %c2_16] : memref<10x3xf32, #tpu.memory_space<smem>>
    %38 = vector.broadcast %37 : f32 to vector<8x256xf32>
    %39 = arith.mulf %10, %38 : vector<8x256xf32>
    %40 = arith.addf %36, %39 : vector<8x256xf32>
    %cst_17 = arith.constant 0.000000e+00 : f32
    %41 = vector.broadcast %cst_17 : f32 to vector<8x256xf32>
    %42 = arith.maximumf %40, %41 : vector<8x256xf32>
    %c2_18 = arith.constant 2 : index
    %c0_19 = arith.constant 0 : index
    %43 = memref.load %arg1[%c2_18, %c0_19] : memref<10x3xf32, #tpu.memory_space<smem>>
    %44 = vector.broadcast %43 : f32 to vector<8x256xf32>
    %45 = arith.mulf %4, %44 : vector<8x256xf32>
    %c2_20 = arith.constant 2 : index
    %46 = memref.load %arg2[%c2_20] : memref<10xf32, #tpu.memory_space<smem>>
    %47 = vector.broadcast %46 : f32 to vector<8x256xf32>
    %48 = arith.addf %45, %47 : vector<8x256xf32>
    %c2_21 = arith.constant 2 : index
    %c1_22 = arith.constant 1 : index
    %49 = memref.load %arg1[%c2_21, %c1_22] : memref<10x3xf32, #tpu.memory_space<smem>>
    %50 = vector.broadcast %49 : f32 to vector<8x256xf32>
    %51 = arith.mulf %7, %50 : vector<8x256xf32>
    %52 = arith.addf %48, %51 : vector<8x256xf32>
    %c2_23 = arith.constant 2 : index
    %c2_24 = arith.constant 2 : index
    %53 = memref.load %arg1[%c2_23, %c2_24] : memref<10x3xf32, #tpu.memory_space<smem>>
    %54 = vector.broadcast %53 : f32 to vector<8x256xf32>
    %55 = arith.mulf %10, %54 : vector<8x256xf32>
    %56 = arith.addf %52, %55 : vector<8x256xf32>
    %cst_25 = arith.constant 0.000000e+00 : f32
    %57 = vector.broadcast %cst_25 : f32 to vector<8x256xf32>
    %58 = arith.maximumf %56, %57 : vector<8x256xf32>
    %c3 = arith.constant 3 : index
    %c0_26 = arith.constant 0 : index
    %59 = memref.load %arg1[%c3, %c0_26] : memref<10x3xf32, #tpu.memory_space<smem>>
    %60 = vector.broadcast %59 : f32 to vector<8x256xf32>
    %61 = arith.mulf %4, %60 : vector<8x256xf32>
    %c3_27 = arith.constant 3 : index
    %62 = memref.load %arg2[%c3_27] : memref<10xf32, #tpu.memory_space<smem>>
    %63 = vector.broadcast %62 : f32 to vector<8x256xf32>
    %64 = arith.addf %61, %63 : vector<8x256xf32>
    %c3_28 = arith.constant 3 : index
    %c1_29 = arith.constant 1 : index
    %65 = memref.load %arg1[%c3_28, %c1_29] : memref<10x3xf32, #tpu.memory_space<smem>>
    %66 = vector.broadcast %65 : f32 to vector<8x256xf32>
    %67 = arith.mulf %7, %66 : vector<8x256xf32>
    %68 = arith.addf %64, %67 : vector<8x256xf32>
    %c3_30 = arith.constant 3 : index
    %c2_31 = arith.constant 2 : index
    %69 = memref.load %arg1[%c3_30, %c2_31] : memref<10x3xf32, #tpu.memory_space<smem>>
    %70 = vector.broadcast %69 : f32 to vector<8x256xf32>
    %71 = arith.mulf %10, %70 : vector<8x256xf32>
    %72 = arith.addf %68, %71 : vector<8x256xf32>
    %cst_32 = arith.constant 0.000000e+00 : f32
    %73 = vector.broadcast %cst_32 : f32 to vector<8x256xf32>
    %74 = arith.maximumf %72, %73 : vector<8x256xf32>
    %c4 = arith.constant 4 : index
    %c0_33 = arith.constant 0 : index
    %75 = memref.load %arg1[%c4, %c0_33] : memref<10x3xf32, #tpu.memory_space<smem>>
    %76 = vector.broadcast %75 : f32 to vector<8x256xf32>
    %77 = arith.mulf %4, %76 : vector<8x256xf32>
    %c4_34 = arith.constant 4 : index
    %78 = memref.load %arg2[%c4_34] : memref<10xf32, #tpu.memory_space<smem>>
    %79 = vector.broadcast %78 : f32 to vector<8x256xf32>
    %80 = arith.addf %77, %79 : vector<8x256xf32>
    %c4_35 = arith.constant 4 : index
    %c1_36 = arith.constant 1 : index
    %81 = memref.load %arg1[%c4_35, %c1_36] : memref<10x3xf32, #tpu.memory_space<smem>>
    %82 = vector.broadcast %81 : f32 to vector<8x256xf32>
    %83 = arith.mulf %7, %82 : vector<8x256xf32>
    %84 = arith.addf %80, %83 : vector<8x256xf32>
    %c4_37 = arith.constant 4 : index
    %c2_38 = arith.constant 2 : index
    %85 = memref.load %arg1[%c4_37, %c2_38] : memref<10x3xf32, #tpu.memory_space<smem>>
    %86 = vector.broadcast %85 : f32 to vector<8x256xf32>
    %87 = arith.mulf %10, %86 : vector<8x256xf32>
    %88 = arith.addf %84, %87 : vector<8x256xf32>
    %cst_39 = arith.constant 0.000000e+00 : f32
    %89 = vector.broadcast %cst_39 : f32 to vector<8x256xf32>
    %90 = arith.maximumf %88, %89 : vector<8x256xf32>
    %c5 = arith.constant 5 : index
    %c0_40 = arith.constant 0 : index
    %91 = memref.load %arg1[%c5, %c0_40] : memref<10x3xf32, #tpu.memory_space<smem>>
    %92 = vector.broadcast %91 : f32 to vector<8x256xf32>
    %93 = arith.mulf %4, %92 : vector<8x256xf32>
    %c5_41 = arith.constant 5 : index
    %94 = memref.load %arg2[%c5_41] : memref<10xf32, #tpu.memory_space<smem>>
    %95 = vector.broadcast %94 : f32 to vector<8x256xf32>
    %96 = arith.addf %93, %95 : vector<8x256xf32>
    %c5_42 = arith.constant 5 : index
    %c1_43 = arith.constant 1 : index
    %97 = memref.load %arg1[%c5_42, %c1_43] : memref<10x3xf32, #tpu.memory_space<smem>>
    %98 = vector.broadcast %97 : f32 to vector<8x256xf32>
    %99 = arith.mulf %7, %98 : vector<8x256xf32>
    %100 = arith.addf %96, %99 : vector<8x256xf32>
    %c5_44 = arith.constant 5 : index
    %c2_45 = arith.constant 2 : index
    %101 = memref.load %arg1[%c5_44, %c2_45] : memref<10x3xf32, #tpu.memory_space<smem>>
    %102 = vector.broadcast %101 : f32 to vector<8x256xf32>
    %103 = arith.mulf %10, %102 : vector<8x256xf32>
    %104 = arith.addf %100, %103 : vector<8x256xf32>
    %cst_46 = arith.constant 0.000000e+00 : f32
    %105 = vector.broadcast %cst_46 : f32 to vector<8x256xf32>
    %106 = arith.maximumf %104, %105 : vector<8x256xf32>
    %c6 = arith.constant 6 : index
    %c0_47 = arith.constant 0 : index
    %107 = memref.load %arg1[%c6, %c0_47] : memref<10x3xf32, #tpu.memory_space<smem>>
    %108 = vector.broadcast %107 : f32 to vector<8x256xf32>
    %109 = arith.mulf %4, %108 : vector<8x256xf32>
    %c6_48 = arith.constant 6 : index
    %110 = memref.load %arg2[%c6_48] : memref<10xf32, #tpu.memory_space<smem>>
    %111 = vector.broadcast %110 : f32 to vector<8x256xf32>
    %112 = arith.addf %109, %111 : vector<8x256xf32>
    %c6_49 = arith.constant 6 : index
    %c1_50 = arith.constant 1 : index
    %113 = memref.load %arg1[%c6_49, %c1_50] : memref<10x3xf32, #tpu.memory_space<smem>>
    %114 = vector.broadcast %113 : f32 to vector<8x256xf32>
    %115 = arith.mulf %7, %114 : vector<8x256xf32>
    %116 = arith.addf %112, %115 : vector<8x256xf32>
    %c6_51 = arith.constant 6 : index
    %c2_52 = arith.constant 2 : index
    %117 = memref.load %arg1[%c6_51, %c2_52] : memref<10x3xf32, #tpu.memory_space<smem>>
    %118 = vector.broadcast %117 : f32 to vector<8x256xf32>
    %119 = arith.mulf %10, %118 : vector<8x256xf32>
    %120 = arith.addf %116, %119 : vector<8x256xf32>
    %cst_53 = arith.constant 0.000000e+00 : f32
    %121 = vector.broadcast %cst_53 : f32 to vector<8x256xf32>
    %122 = arith.maximumf %120, %121 : vector<8x256xf32>
    %c7 = arith.constant 7 : index
    %c0_54 = arith.constant 0 : index
    %123 = memref.load %arg1[%c7, %c0_54] : memref<10x3xf32, #tpu.memory_space<smem>>
    %124 = vector.broadcast %123 : f32 to vector<8x256xf32>
    %125 = arith.mulf %4, %124 : vector<8x256xf32>
    %c7_55 = arith.constant 7 : index
    %126 = memref.load %arg2[%c7_55] : memref<10xf32, #tpu.memory_space<smem>>
    %127 = vector.broadcast %126 : f32 to vector<8x256xf32>
    %128 = arith.addf %125, %127 : vector<8x256xf32>
    %c7_56 = arith.constant 7 : index
    %c1_57 = arith.constant 1 : index
    %129 = memref.load %arg1[%c7_56, %c1_57] : memref<10x3xf32, #tpu.memory_space<smem>>
    %130 = vector.broadcast %129 : f32 to vector<8x256xf32>
    %131 = arith.mulf %7, %130 : vector<8x256xf32>
    %132 = arith.addf %128, %131 : vector<8x256xf32>
    %c7_58 = arith.constant 7 : index
    %c2_59 = arith.constant 2 : index
    %133 = memref.load %arg1[%c7_58, %c2_59] : memref<10x3xf32, #tpu.memory_space<smem>>
    %134 = vector.broadcast %133 : f32 to vector<8x256xf32>
    %135 = arith.mulf %10, %134 : vector<8x256xf32>
    %136 = arith.addf %132, %135 : vector<8x256xf32>
    %cst_60 = arith.constant 0.000000e+00 : f32
    %137 = vector.broadcast %cst_60 : f32 to vector<8x256xf32>
    %138 = arith.maximumf %136, %137 : vector<8x256xf32>
    %c8 = arith.constant 8 : index
    %c0_61 = arith.constant 0 : index
    %139 = memref.load %arg1[%c8, %c0_61] : memref<10x3xf32, #tpu.memory_space<smem>>
    %140 = vector.broadcast %139 : f32 to vector<8x256xf32>
    %141 = arith.mulf %4, %140 : vector<8x256xf32>
    %c8_62 = arith.constant 8 : index
    %142 = memref.load %arg2[%c8_62] : memref<10xf32, #tpu.memory_space<smem>>
    %143 = vector.broadcast %142 : f32 to vector<8x256xf32>
    %144 = arith.addf %141, %143 : vector<8x256xf32>
    %c8_63 = arith.constant 8 : index
    %c1_64 = arith.constant 1 : index
    %145 = memref.load %arg1[%c8_63, %c1_64] : memref<10x3xf32, #tpu.memory_space<smem>>
    %146 = vector.broadcast %145 : f32 to vector<8x256xf32>
    %147 = arith.mulf %7, %146 : vector<8x256xf32>
    %148 = arith.addf %144, %147 : vector<8x256xf32>
    %c8_65 = arith.constant 8 : index
    %c2_66 = arith.constant 2 : index
    %149 = memref.load %arg1[%c8_65, %c2_66] : memref<10x3xf32, #tpu.memory_space<smem>>
    %150 = vector.broadcast %149 : f32 to vector<8x256xf32>
    %151 = arith.mulf %10, %150 : vector<8x256xf32>
    %152 = arith.addf %148, %151 : vector<8x256xf32>
    %cst_67 = arith.constant 0.000000e+00 : f32
    %153 = vector.broadcast %cst_67 : f32 to vector<8x256xf32>
    %154 = arith.maximumf %152, %153 : vector<8x256xf32>
    %c9 = arith.constant 9 : index
    %c0_68 = arith.constant 0 : index
    %155 = memref.load %arg1[%c9, %c0_68] : memref<10x3xf32, #tpu.memory_space<smem>>
    %156 = vector.broadcast %155 : f32 to vector<8x256xf32>
    %157 = arith.mulf %4, %156 : vector<8x256xf32>
    %c9_69 = arith.constant 9 : index
    %158 = memref.load %arg2[%c9_69] : memref<10xf32, #tpu.memory_space<smem>>
    %159 = vector.broadcast %158 : f32 to vector<8x256xf32>
    %160 = arith.addf %157, %159 : vector<8x256xf32>
    %c9_70 = arith.constant 9 : index
    %c1_71 = arith.constant 1 : index
    %161 = memref.load %arg1[%c9_70, %c1_71] : memref<10x3xf32, #tpu.memory_space<smem>>
    %162 = vector.broadcast %161 : f32 to vector<8x256xf32>
    %163 = arith.mulf %7, %162 : vector<8x256xf32>
    %164 = arith.addf %160, %163 : vector<8x256xf32>
    %c9_72 = arith.constant 9 : index
    %c2_73 = arith.constant 2 : index
    %165 = memref.load %arg1[%c9_72, %c2_73] : memref<10x3xf32, #tpu.memory_space<smem>>
    %166 = vector.broadcast %165 : f32 to vector<8x256xf32>
    %167 = arith.mulf %10, %166 : vector<8x256xf32>
    %168 = arith.addf %164, %167 : vector<8x256xf32>
    %cst_74 = arith.constant 0.000000e+00 : f32
    %169 = vector.broadcast %cst_74 : f32 to vector<8x256xf32>
    %170 = arith.maximumf %168, %169 : vector<8x256xf32>
    %c0_75 = arith.constant 0 : index
    %c0_76 = arith.constant 0 : index
    %171 = memref.load %arg3[%c0_75, %c0_76] : memref<3x10xf32, #tpu.memory_space<smem>>
    %172 = vector.broadcast %171 : f32 to vector<8x256xf32>
    %173 = arith.mulf %26, %172 : vector<8x256xf32>
    %c0_77 = arith.constant 0 : index
    %174 = memref.load %arg4[%c0_77] : memref<3xf32, #tpu.memory_space<smem>>
    %175 = vector.broadcast %174 : f32 to vector<8x256xf32>
    %176 = arith.addf %173, %175 : vector<8x256xf32>
    %c0_78 = arith.constant 0 : index
    %c1_79 = arith.constant 1 : index
    %177 = memref.load %arg3[%c0_78, %c1_79] : memref<3x10xf32, #tpu.memory_space<smem>>
    %178 = vector.broadcast %177 : f32 to vector<8x256xf32>
    %179 = arith.mulf %42, %178 : vector<8x256xf32>
    %180 = arith.addf %176, %179 : vector<8x256xf32>
    %c0_80 = arith.constant 0 : index
    %c2_81 = arith.constant 2 : index
    %181 = memref.load %arg3[%c0_80, %c2_81] : memref<3x10xf32, #tpu.memory_space<smem>>
    %182 = vector.broadcast %181 : f32 to vector<8x256xf32>
    %183 = arith.mulf %58, %182 : vector<8x256xf32>
    %184 = arith.addf %180, %183 : vector<8x256xf32>
    %c0_82 = arith.constant 0 : index
    %c3_83 = arith.constant 3 : index
    %185 = memref.load %arg3[%c0_82, %c3_83] : memref<3x10xf32, #tpu.memory_space<smem>>
    %186 = vector.broadcast %185 : f32 to vector<8x256xf32>
    %187 = arith.mulf %74, %186 : vector<8x256xf32>
    %188 = arith.addf %184, %187 : vector<8x256xf32>
    %c0_84 = arith.constant 0 : index
    %c4_85 = arith.constant 4 : index
    %189 = memref.load %arg3[%c0_84, %c4_85] : memref<3x10xf32, #tpu.memory_space<smem>>
    %190 = vector.broadcast %189 : f32 to vector<8x256xf32>
    %191 = arith.mulf %90, %190 : vector<8x256xf32>
    %192 = arith.addf %188, %191 : vector<8x256xf32>
    %c0_86 = arith.constant 0 : index
    %c5_87 = arith.constant 5 : index
    %193 = memref.load %arg3[%c0_86, %c5_87] : memref<3x10xf32, #tpu.memory_space<smem>>
    %194 = vector.broadcast %193 : f32 to vector<8x256xf32>
    %195 = arith.mulf %106, %194 : vector<8x256xf32>
    %196 = arith.addf %192, %195 : vector<8x256xf32>
    %c0_88 = arith.constant 0 : index
    %c6_89 = arith.constant 6 : index
    %197 = memref.load %arg3[%c0_88, %c6_89] : memref<3x10xf32, #tpu.memory_space<smem>>
    %198 = vector.broadcast %197 : f32 to vector<8x256xf32>
    %199 = arith.mulf %122, %198 : vector<8x256xf32>
    %200 = arith.addf %196, %199 : vector<8x256xf32>
    %c0_90 = arith.constant 0 : index
    %c7_91 = arith.constant 7 : index
    %201 = memref.load %arg3[%c0_90, %c7_91] : memref<3x10xf32, #tpu.memory_space<smem>>
    %202 = vector.broadcast %201 : f32 to vector<8x256xf32>
    %203 = arith.mulf %138, %202 : vector<8x256xf32>
    %204 = arith.addf %200, %203 : vector<8x256xf32>
    %c0_92 = arith.constant 0 : index
    %c8_93 = arith.constant 8 : index
    %205 = memref.load %arg3[%c0_92, %c8_93] : memref<3x10xf32, #tpu.memory_space<smem>>
    %206 = vector.broadcast %205 : f32 to vector<8x256xf32>
    %207 = arith.mulf %154, %206 : vector<8x256xf32>
    %208 = arith.addf %204, %207 : vector<8x256xf32>
    %c0_94 = arith.constant 0 : index
    %c9_95 = arith.constant 9 : index
    %209 = memref.load %arg3[%c0_94, %c9_95] : memref<3x10xf32, #tpu.memory_space<smem>>
    %210 = vector.broadcast %209 : f32 to vector<8x256xf32>
    %211 = arith.mulf %170, %210 : vector<8x256xf32>
    %212 = arith.addf %208, %211 : vector<8x256xf32>
    %cst_96 = arith.constant 0.000000e+00 : f32
    %213 = vector.broadcast %cst_96 : f32 to vector<8x256xf32>
    %214 = arith.maximumf %212, %213 : vector<8x256xf32>
    %c1_97 = arith.constant 1 : index
    %c0_98 = arith.constant 0 : index
    %215 = memref.load %arg3[%c1_97, %c0_98] : memref<3x10xf32, #tpu.memory_space<smem>>
    %216 = vector.broadcast %215 : f32 to vector<8x256xf32>
    %217 = arith.mulf %26, %216 : vector<8x256xf32>
    %c1_99 = arith.constant 1 : index
    %218 = memref.load %arg4[%c1_99] : memref<3xf32, #tpu.memory_space<smem>>
    %219 = vector.broadcast %218 : f32 to vector<8x256xf32>
    %220 = arith.addf %217, %219 : vector<8x256xf32>
    %c1_100 = arith.constant 1 : index
    %c1_101 = arith.constant 1 : index
    %221 = memref.load %arg3[%c1_100, %c1_101] : memref<3x10xf32, #tpu.memory_space<smem>>
    %222 = vector.broadcast %221 : f32 to vector<8x256xf32>
    %223 = arith.mulf %42, %222 : vector<8x256xf32>
    %224 = arith.addf %220, %223 : vector<8x256xf32>
    %c1_102 = arith.constant 1 : index
    %c2_103 = arith.constant 2 : index
    %225 = memref.load %arg3[%c1_102, %c2_103] : memref<3x10xf32, #tpu.memory_space<smem>>
    %226 = vector.broadcast %225 : f32 to vector<8x256xf32>
    %227 = arith.mulf %58, %226 : vector<8x256xf32>
    %228 = arith.addf %224, %227 : vector<8x256xf32>
    %c1_104 = arith.constant 1 : index
    %c3_105 = arith.constant 3 : index
    %229 = memref.load %arg3[%c1_104, %c3_105] : memref<3x10xf32, #tpu.memory_space<smem>>
    %230 = vector.broadcast %229 : f32 to vector<8x256xf32>
    %231 = arith.mulf %74, %230 : vector<8x256xf32>
    %232 = arith.addf %228, %231 : vector<8x256xf32>
    %c1_106 = arith.constant 1 : index
    %c4_107 = arith.constant 4 : index
    %233 = memref.load %arg3[%c1_106, %c4_107] : memref<3x10xf32, #tpu.memory_space<smem>>
    %234 = vector.broadcast %233 : f32 to vector<8x256xf32>
    %235 = arith.mulf %90, %234 : vector<8x256xf32>
    %236 = arith.addf %232, %235 : vector<8x256xf32>
    %c1_108 = arith.constant 1 : index
    %c5_109 = arith.constant 5 : index
    %237 = memref.load %arg3[%c1_108, %c5_109] : memref<3x10xf32, #tpu.memory_space<smem>>
    %238 = vector.broadcast %237 : f32 to vector<8x256xf32>
    %239 = arith.mulf %106, %238 : vector<8x256xf32>
    %240 = arith.addf %236, %239 : vector<8x256xf32>
    %c1_110 = arith.constant 1 : index
    %c6_111 = arith.constant 6 : index
    %241 = memref.load %arg3[%c1_110, %c6_111] : memref<3x10xf32, #tpu.memory_space<smem>>
    %242 = vector.broadcast %241 : f32 to vector<8x256xf32>
    %243 = arith.mulf %122, %242 : vector<8x256xf32>
    %244 = arith.addf %240, %243 : vector<8x256xf32>
    %c1_112 = arith.constant 1 : index
    %c7_113 = arith.constant 7 : index
    %245 = memref.load %arg3[%c1_112, %c7_113] : memref<3x10xf32, #tpu.memory_space<smem>>
    %246 = vector.broadcast %245 : f32 to vector<8x256xf32>
    %247 = arith.mulf %138, %246 : vector<8x256xf32>
    %248 = arith.addf %244, %247 : vector<8x256xf32>
    %c1_114 = arith.constant 1 : index
    %c8_115 = arith.constant 8 : index
    %249 = memref.load %arg3[%c1_114, %c8_115] : memref<3x10xf32, #tpu.memory_space<smem>>
    %250 = vector.broadcast %249 : f32 to vector<8x256xf32>
    %251 = arith.mulf %154, %250 : vector<8x256xf32>
    %252 = arith.addf %248, %251 : vector<8x256xf32>
    %c1_116 = arith.constant 1 : index
    %c9_117 = arith.constant 9 : index
    %253 = memref.load %arg3[%c1_116, %c9_117] : memref<3x10xf32, #tpu.memory_space<smem>>
    %254 = vector.broadcast %253 : f32 to vector<8x256xf32>
    %255 = arith.mulf %170, %254 : vector<8x256xf32>
    %256 = arith.addf %252, %255 : vector<8x256xf32>
    %cst_118 = arith.constant 0.000000e+00 : f32
    %257 = vector.broadcast %cst_118 : f32 to vector<8x256xf32>
    %258 = arith.maximumf %256, %257 : vector<8x256xf32>
    %c2_119 = arith.constant 2 : index
    %c0_120 = arith.constant 0 : index
    %259 = memref.load %arg3[%c2_119, %c0_120] : memref<3x10xf32, #tpu.memory_space<smem>>
    %260 = vector.broadcast %259 : f32 to vector<8x256xf32>
    %261 = arith.mulf %26, %260 : vector<8x256xf32>
    %c2_121 = arith.constant 2 : index
    %262 = memref.load %arg4[%c2_121] : memref<3xf32, #tpu.memory_space<smem>>
    %263 = vector.broadcast %262 : f32 to vector<8x256xf32>
    %264 = arith.addf %261, %263 : vector<8x256xf32>
    %c2_122 = arith.constant 2 : index
    %c1_123 = arith.constant 1 : index
    %265 = memref.load %arg3[%c2_122, %c1_123] : memref<3x10xf32, #tpu.memory_space<smem>>
    %266 = vector.broadcast %265 : f32 to vector<8x256xf32>
    %267 = arith.mulf %42, %266 : vector<8x256xf32>
    %268 = arith.addf %264, %267 : vector<8x256xf32>
    %c2_124 = arith.constant 2 : index
    %c2_125 = arith.constant 2 : index
    %269 = memref.load %arg3[%c2_124, %c2_125] : memref<3x10xf32, #tpu.memory_space<smem>>
    %270 = vector.broadcast %269 : f32 to vector<8x256xf32>
    %271 = arith.mulf %58, %270 : vector<8x256xf32>
    %272 = arith.addf %268, %271 : vector<8x256xf32>
    %c2_126 = arith.constant 2 : index
    %c3_127 = arith.constant 3 : index
    %273 = memref.load %arg3[%c2_126, %c3_127] : memref<3x10xf32, #tpu.memory_space<smem>>
    %274 = vector.broadcast %273 : f32 to vector<8x256xf32>
    %275 = arith.mulf %74, %274 : vector<8x256xf32>
    %276 = arith.addf %272, %275 : vector<8x256xf32>
    %c2_128 = arith.constant 2 : index
    %c4_129 = arith.constant 4 : index
    %277 = memref.load %arg3[%c2_128, %c4_129] : memref<3x10xf32, #tpu.memory_space<smem>>
    %278 = vector.broadcast %277 : f32 to vector<8x256xf32>
    %279 = arith.mulf %90, %278 : vector<8x256xf32>
    %280 = arith.addf %276, %279 : vector<8x256xf32>
    %c2_130 = arith.constant 2 : index
    %c5_131 = arith.constant 5 : index
    %281 = memref.load %arg3[%c2_130, %c5_131] : memref<3x10xf32, #tpu.memory_space<smem>>
    %282 = vector.broadcast %281 : f32 to vector<8x256xf32>
    %283 = arith.mulf %106, %282 : vector<8x256xf32>
    %284 = arith.addf %280, %283 : vector<8x256xf32>
    %c2_132 = arith.constant 2 : index
    %c6_133 = arith.constant 6 : index
    %285 = memref.load %arg3[%c2_132, %c6_133] : memref<3x10xf32, #tpu.memory_space<smem>>
    %286 = vector.broadcast %285 : f32 to vector<8x256xf32>
    %287 = arith.mulf %122, %286 : vector<8x256xf32>
    %288 = arith.addf %284, %287 : vector<8x256xf32>
    %c2_134 = arith.constant 2 : index
    %c7_135 = arith.constant 7 : index
    %289 = memref.load %arg3[%c2_134, %c7_135] : memref<3x10xf32, #tpu.memory_space<smem>>
    %290 = vector.broadcast %289 : f32 to vector<8x256xf32>
    %291 = arith.mulf %138, %290 : vector<8x256xf32>
    %292 = arith.addf %288, %291 : vector<8x256xf32>
    %c2_136 = arith.constant 2 : index
    %c8_137 = arith.constant 8 : index
    %293 = memref.load %arg3[%c2_136, %c8_137] : memref<3x10xf32, #tpu.memory_space<smem>>
    %294 = vector.broadcast %293 : f32 to vector<8x256xf32>
    %295 = arith.mulf %154, %294 : vector<8x256xf32>
    %296 = arith.addf %292, %295 : vector<8x256xf32>
    %c2_138 = arith.constant 2 : index
    %c9_139 = arith.constant 9 : index
    %297 = memref.load %arg3[%c2_138, %c9_139] : memref<3x10xf32, #tpu.memory_space<smem>>
    %298 = vector.broadcast %297 : f32 to vector<8x256xf32>
    %299 = arith.mulf %170, %298 : vector<8x256xf32>
    %300 = arith.addf %296, %299 : vector<8x256xf32>
    %cst_140 = arith.constant 0.000000e+00 : f32
    %301 = vector.broadcast %cst_140 : f32 to vector<8x256xf32>
    %302 = arith.maximumf %300, %301 : vector<8x256xf32>
    %c0_141 = arith.constant 0 : index
    %c0_142 = arith.constant 0 : index
    %303 = memref.load %arg5[%c0_141, %c0_142] : memref<2x3xf32, #tpu.memory_space<smem>>
    %304 = vector.broadcast %303 : f32 to vector<8x256xf32>
    %305 = arith.mulf %214, %304 : vector<8x256xf32>
    %c0_143 = arith.constant 0 : index
    %306 = memref.load %arg6[%c0_143] : memref<2xf32, #tpu.memory_space<smem>>
    %307 = vector.broadcast %306 : f32 to vector<8x256xf32>
    %308 = arith.addf %305, %307 : vector<8x256xf32>
    %c0_144 = arith.constant 0 : index
    %c1_145 = arith.constant 1 : index
    %309 = memref.load %arg5[%c0_144, %c1_145] : memref<2x3xf32, #tpu.memory_space<smem>>
    %310 = vector.broadcast %309 : f32 to vector<8x256xf32>
    %311 = arith.mulf %258, %310 : vector<8x256xf32>
    %312 = arith.addf %308, %311 : vector<8x256xf32>
    %c0_146 = arith.constant 0 : index
    %c2_147 = arith.constant 2 : index
    %313 = memref.load %arg5[%c0_146, %c2_147] : memref<2x3xf32, #tpu.memory_space<smem>>
    %314 = vector.broadcast %313 : f32 to vector<8x256xf32>
    %315 = arith.mulf %302, %314 : vector<8x256xf32>
    %316 = arith.addf %312, %315 : vector<8x256xf32>
    %c1_148 = arith.constant 1 : index
    %c0_149 = arith.constant 0 : index
    %317 = memref.load %arg5[%c1_148, %c0_149] : memref<2x3xf32, #tpu.memory_space<smem>>
    %318 = vector.broadcast %317 : f32 to vector<8x256xf32>
    %319 = arith.mulf %214, %318 : vector<8x256xf32>
    %c1_150 = arith.constant 1 : index
    %320 = memref.load %arg6[%c1_150] : memref<2xf32, #tpu.memory_space<smem>>
    %321 = vector.broadcast %320 : f32 to vector<8x256xf32>
    %322 = arith.addf %319, %321 : vector<8x256xf32>
    %c1_151 = arith.constant 1 : index
    %c1_152 = arith.constant 1 : index
    %323 = memref.load %arg5[%c1_151, %c1_152] : memref<2x3xf32, #tpu.memory_space<smem>>
    %324 = vector.broadcast %323 : f32 to vector<8x256xf32>
    %325 = arith.mulf %258, %324 : vector<8x256xf32>
    %326 = arith.addf %322, %325 : vector<8x256xf32>
    %c1_153 = arith.constant 1 : index
    %c2_154 = arith.constant 2 : index
    %327 = memref.load %arg5[%c1_153, %c2_154] : memref<2x3xf32, #tpu.memory_space<smem>>
    %328 = vector.broadcast %327 : f32 to vector<8x256xf32>
    %329 = arith.mulf %302, %328 : vector<8x256xf32>
    %330 = arith.addf %326, %329 : vector<8x256xf32>
    %331 = arith.subf %316, %330 : vector<8x256xf32>
    %332 = math.absf %331 : vector<8x256xf32>
    %cst_155 = arith.constant 0.000000e+00 : f32
    %333 = vector.broadcast %cst_155 : f32 to vector<8x256xf32>
    %334 = arith.subf %333, %332 : vector<8x256xf32>
    %335 = math.exp %334 : vector<8x256xf32>
    %cst_156 = arith.constant 1.000000e+00 : f32
    %336 = vector.broadcast %cst_156 : f32 to vector<8x256xf32>
    %337 = arith.addf %336, %335 : vector<8x256xf32>
    %338 = tpu.reciprocal %337 {approx = true} : vector<8x256xf32> -> vector<8x256xf32>
    %339 = arith.mulf %337, %338 : vector<8x256xf32>
    %cst_157 = arith.constant 2.000000e+00 : f32
    %340 = vector.broadcast %cst_157 : f32 to vector<8x256xf32>
    %341 = arith.subf %340, %339 : vector<8x256xf32>
    %342 = arith.mulf %338, %341 : vector<8x256xf32>
    %343 = arith.mulf %335, %342 : vector<8x256xf32>
    %cst_158 = arith.constant 0.000000e+00 : f32
    %344 = vector.broadcast %cst_158 : f32 to vector<8x256xf32>
    %345 = arith.cmpf oge, %331, %344 : vector<8x256xf32>
    %346 = arith.select %345, %342, %343 : vector<8x256xi1>, vector<8x256xf32>
    %c0_159 = arith.constant 0 : index
    %347 = arith.index_cast %1 : i32 to index
    %c0_160 = arith.constant 0 : index
    %348 = vector.load %arg8[%c0_159, %347, %c0_160] : memref<2x8x256xf32, #tpu.memory_space<vmem>>, vector<1x8x256xf32>
    %349 = vector.shape_cast %348 : vector<1x8x256xf32> to vector<8x256xf32>
    %350 = vector.shape_cast %346 : vector<8x256xf32> to vector<1x8x256xf32>
    tpu.vector_store %arg8[%c0_159, %347, %c0_160], %350 {strides = array<i32>} : memref<2x8x256xf32, #tpu.memory_space<vmem>>, vector<1x8x256xf32>,
    %351 = arith.select %345, %343, %342 : vector<8x256xi1>, vector<8x256xf32>
    %c1_161 = arith.constant 1 : index
    %352 = arith.index_cast %1 : i32 to index
    %c0_162 = arith.constant 0 : index
    %353 = vector.load %arg8[%c1_161, %352, %c0_162] : memref<2x8x256xf32, #tpu.memory_space<vmem>>, vector<1x8x256xf32>
    %354 = vector.shape_cast %353 : vector<1x8x256xf32> to vector<8x256xf32>
    %355 = vector.shape_cast %351 : vector<8x256xf32> to vector<1x8x256xf32>
    tpu.vector_store %arg8[%c1_161, %352, %c0_162], %355 {strides = array<i32>} : memref<2x8x256xf32, #tpu.memory_space<vmem>>, vector<1x8x256xf32>,
    %c1_i32 = arith.constant 1 : i32
    return
  }
  func.func @transform_0(%arg0: i32) -> (i32, i32) {
    %c0_i32 = arith.constant 0 : i32
    %c0_i32_0 = arith.constant 0 : i32
    %c0_i32_1 = arith.constant 0 : i32
    return %c0_i32, %c0_i32_0 : i32, i32
  }
  func.func @transform_1(%arg0: i32) -> i32 {
    %c0_i32 = arith.constant 0 : i32
    %c0_i32_0 = arith.constant 0 : i32
    return %c0_i32 : i32
  }
  func.func @transform_2(%arg0: i32) -> (i32, i32) {
    %c0_i32 = arith.constant 0 : i32
    %c0_i32_0 = arith.constant 0 : i32
    %c0_i32_1 = arith.constant 0 : i32
    return %c0_i32, %c0_i32_0 : i32, i32
  }
  func.func @transform_3(%arg0: i32) -> i32 {
    %c0_i32 = arith.constant 0 : i32
    %c0_i32_0 = arith.constant 0 : i32
    return %c0_i32 : i32
  }
  func.func @transform_4(%arg0: i32) -> (i32, i32) {
    %c0_i32 = arith.constant 0 : i32
    %c0_i32_0 = arith.constant 0 : i32
    %c0_i32_1 = arith.constant 0 : i32
    return %c0_i32, %c0_i32_0 : i32, i32
  }
  func.func @transform_5(%arg0: i32) -> i32 {
    %c0_i32 = arith.constant 0 : i32
    %c0_i32_0 = arith.constant 0 : i32
    return %c0_i32 : i32
  }
  func.func @transform_6(%arg0: i32) -> (i32, i32, i32) {
    %c0_i32 = arith.constant 0 : i32
    %c0_i32_0 = arith.constant 0 : i32
    %c0_i32_1 = arith.constant 0 : i32
    return %c0_i32, %arg0, %c0_i32_0 : i32, i32, i32
  }
  func.func @transform_7(%arg0: i32) -> (i32, i32, i32) {
    %c0_i32 = arith.constant 0 : i32
    %c0_i32_0 = arith.constant 0 : i32
    %c0_i32_1 = arith.constant 0 : i32
    return %c0_i32, %arg0, %c0_i32_0 : i32, i32, i32
  }
}

</mosaic_0001>

<bundles_post_ra>
// kernel: tpu_custom_call.1
= control target key start
LH: loop header
LB: loop body
LE: loop exit
PB: predicated region body
PF: predicated region fallthrough
CT: control target
= control target key end

     0   :  { %12 = vsyncpa [#allocation5], 0  ;;  %s1357_s0 = inlined_call_operand.vmem [shape: f32[10,3], index: 0, kind: input, shape index: {}]   ;;  %s1358_s1 = inlined_call_operand.vmem [shape: f32[10], index: 1, kind: input, shape index: {}]   ;;  %s1359_s2 = inlined_call_operand.vmem [shape: f32[3,10], index: 2, kind: input, shape index: {}]   ;;  %s1360_s3 = inlined_call_operand.vmem [shape: f32[3], index: 3, kind: input, shape index: {}]   ;;  %s1361_s4 = inlined_call_operand.vmem [shape: f32[2,3], index: 4, kind: input, shape index: {}]   ;;  %s1362_s5 = inlined_call_operand.vmem [shape: f32[2], index: 5, kind: input, shape index: {}]   ;;  %s1363_s6 = inlined_call_operand.hbm [shape: f32[3,8,256], index: 6, kind: input, shape index: {}]   ;;  %s1364_s7 = inlined_call_operand.hbm [shape: f32[2,8,256], index: 7, kind: output, shape index: {}]  }
   0x1   :  { %13 = vsyncpa [#allocation7], 0 }
   0x2   :  { %14 = vsyncpa [#allocation10], 0 }
   0x3   :  { %15 = vsyncpa [#allocation13], 0 }
   0x4   :  { %16 = vsyncpa [#allocation3], 0  ;;  %s34_s26 = sshll.u32 %s1358_s1, 4  ;;  %s35_s26 = int_to_ptr.vmem [resolvable:$true] %s34_s26 }
   0x5   :  { %17 = vsyncpa [#allocation4], 0  ;;  %s52_s29 = sshll.u32 %s1360_s3, 4  ;;  %s872_s30 = smov [#allocation6]   ;;  %s53_s29 = int_to_ptr.vmem [resolvable:$true] %s52_s29 }
   0x6   :  { %37 = dma.vmem_to_smem %s35_s26, 16, %s872_s30, [#allocation7]  }
   0x7   :  { %s873_s8 = smov [#allocation9]   ;;  %s22_s11 = sshll.u32 %s1357_s0, 4  ;;  %s23_s11 = int_to_ptr.vmem [resolvable:$true] %s22_s11 }
   0x8   :  { %55 = dma.vmem_to_smem %s53_s29, 16, %s873_s8, [#allocation10]  }
   0x9   :  { %s43_s1 = sshll.u32 %s1359_s2, 4  ;;  %s874_s14 = smov [#allocation2]   ;;  %s44_s1 = int_to_ptr.vmem [resolvable:$true] %s43_s1 }
   0xa   :  { %s875_s15 = smov 128   ;;  %s876_s16 = smov 8  }
   0xb   :  { %28 = dma.vmem_to_smem %s23_s11, 256, %s874_s14, [#allocation5], %s875_s15, %s875_s15, %s876_s16  }
   0xc   :  { %s877_s3 = smov [#allocation8]   ;;  %s61_s19 = sshll.u32 %s1361_s4, 4  ;;  %s62_s19 = int_to_ptr.vmem [resolvable:$true] %s61_s19 }
   0xd   :  { %46 = dma.vmem_to_smem %s44_s1, 64, %s877_s3, [#allocation7]  }
   0xe   :  { %s70_s0 = sshll.u32 %s1362_s5, 4  ;;  %s878_s22 = smov [#allocation11]   ;;  %s71_s0 = int_to_ptr.vmem [resolvable:$true] %s70_s0 }
   0xf   :  { %64 = dma.vmem_to_smem %s62_s19, 32, %s878_s22, [#allocation10]  }
  0x10   :  { %s879_s2 = smov [#allocation12]   ;;  %s78_s25 = sshll.u32 %s1363_s6, 4  ;;  %s79_s25 = int_to_ptr.hbm [resolvable:$true] %s78_s25 }
  0x11   :  { %73 = dma.vmem_to_smem %s71_s0, 16, %s879_s2, [#allocation13]  }
  0x12   :  { %s880_s26 = smov [#allocation14]   ;;  %s881_s28 = smov 256  }
  0x13   :  { %s80_s27 = sshll.u32 %s880_s26, 4  ;;  %s882_s4 = smov 16   ;;  %s81_s27 = int_to_ptr.vmem [resolvable:$true] %s80_s27 }
  0x14   :  { %86 = dma.hbm_to_vmem [thread:$0]  %s79_s25, 768, %s81_s27, [#allocation3], %s881_s28, %s881_s28, %s882_s4  }
  0x15   :  { %860 = dma.done.wait [#allocation5], 256  }
  0x16   :  { %861 = vsyncadd [#allocation5], 4294967040 }
  0x17   :  { %862 = dma.done.wait [#allocation7], 80  }
  0x18   :  { %863 = vsyncadd [#allocation7], 4294967216 }
  0x19   :  { %864 = dma.done.wait [#allocation10], 48  }
  0x1a   :  { %865 = vsyncadd [#allocation10], 4294967248 }
  0x1b   :  { %866 = dma.done.wait [#allocation13], 16  }
  0x1c   :  { %867 = vsyncadd [#allocation13], 4294967280 }
  0x1d   :  { %868 = dma.done.wait [#allocation3], 768  }
  0x1e   :  { %869 = vsyncadd [#allocation3], 4294966528 }
  0x1f   :  { %115 = sfence }
  0x20   :  { %s131_s5 = sld [smem:[#allocation2]]  ;;  %v948_v0 = vld [vmem:[#allocation14] sm:$0xff]  ;;  %v950_v1 = vld [vmem:[#allocation14 + $0x8] sm:$0xff]  ;;  %v954_v2 = vld [vmem:[#allocation14 + $0x10] sm:$0xff] }
  0x21   :  { %s135_s6 = sld [smem:[#allocation6]]  ;;  %v956_v3 = vld [vmem:[#allocation14 + $0x18] sm:$0xff]  ;;  %v962_v8 = vld [vmem:[#allocation14 + $0x20] sm:$0xff]  ;;  %v964_v9 = vld [vmem:[#allocation14 + $0x28] sm:$0xff] }
  0x22   :  { %s645_s29 = sld [smem:[#allocation2 + $0x1]] }
  0x23   :  { %s646_s30 = sld [smem:[#allocation2 + $0x2]] }
  0x24   :  { %s647_s8 = sld [smem:[#allocation2 + $0x80]] }
  0x25   :  { %s952_s9 = sld [smem:[#allocation6 + $0x1]] }
  0x26   :  { %v132_v4 = vstv %s131_s5  ;;  %s649_s10 = sld [smem:[#allocation2 + $0x81]] }
  0x27   :  { %v133_v5 = vmul.f32 %v132_v4, %v948_v0  ;;  %v134_v6 = vmul.f32 %v132_v4, %v950_v1  ;;  %v136_v7 = vstv %s135_s6  ;;  %s960_s11 = sld [smem:[#allocation2 + $0x82]] }
  0x28   :  { %v140_v10 = vstv %s645_s29  ;;  %s966_s12 = sld [smem:[#allocation2 + $0x100]] }
  0x29   :  { %v137_v11 = vadd.f32 %v136_v7, %v133_v5  ;;  %v138_v12 = vadd.f32 %v136_v7, %v134_v6  ;;  %v141_v13 = vmul.f32 %v140_v10, %v954_v2  ;;  %v142_v14 = vmul.f32 %v140_v10, %v956_v3  ;;  %s970_s13 = sld [smem:[#allocation6 + $0x2]] }
  0x2a   :  { %v146_v15 = vstv %s646_s30  ;;  %v154_v16 = vstv %s647_s8  ;;  %s972_s1 = sld [smem:[#allocation2 + $0x101]] }
  0x2b   :  { %v143_v17 = vadd.f32 %v141_v13, %v137_v11  ;;  %v144_v18 = vadd.f32 %v142_v14, %v138_v12  ;;  %v147_v19 = vmul.f32 %v146_v15, %v962_v8  ;;  %v148_v20 = vmul.f32 %v146_v15, %v964_v9  ;;  %s976_s14 = sld [smem:[#allocation2 + $0x102]] }
  0x2c   :  { %v155_v21 = vmul.f32 %v154_v16, %v948_v0  ;;  %v156_v22 = vmul.f32 %v154_v16, %v950_v1  ;;  %v158_v23 = vstv %s952_s9  ;;  %v162_v24 = vstv %s649_s10  ;;  %s981_s15 = sld [smem:[#allocation2 + $0x180]] }
  0x2d   :  { %v149_v25 = vadd.f32 %v147_v19, %v143_v17  ;;  %v163_v26 = vmul.f32 %v162_v24, %v954_v2  ;;  %v164_v27 = vmul.f32 %v162_v24, %v956_v3  ;;  %s985_s16 = sld [smem:[#allocation6 + $0x3]]  ;;  %v168_v30 = vstv %s960_s11 }
  0x2e   :  { %v159_v28 = vadd.f32 %v158_v23, %v155_v21  ;;  %v160_v29 = vadd.f32 %v158_v23, %v156_v22  ;;  %v176_v31 = vstv %s966_s12  ;;  %s989_s3 = sld [smem:[#allocation2 + $0x181]]  ;;  %v150_v32 = vadd.f32 %v148_v20, %v144_v18 }
  0x2f   :  { %v169_v33 = vmul.f32 %v168_v30, %v962_v8  ;;  %v170_v34 = vmul.f32 %v168_v30, %v964_v9  ;;  %s993_s17 = sld [smem:[#allocation2 + $0x182]]  ;;  %v177_v37 = vmul.f32 %v176_v31, %v948_v0  ;;  %v178_v38 = vmul.f32 %v176_v31, %v950_v1 }
  0x30   :  { %v165_v35 = vadd.f32 %v163_v26, %v159_v28  ;;  %v166_v36 = vadd.f32 %v164_v27, %v160_v29  ;;  %s997_s18 = sld [smem:[#allocation2 + $0x200]]  ;;  %v999_v39 = vmax.f32 %v149_v25, 0.0  ;;  %v180_v40 = vstv %s970_s13 }
  0x31   :  { %v184_v41 = vstv %s972_s1  ;;  %v190_v42 = vstv %s976_s14  ;;  %s1004_s19 = sld [smem:[#allocation6 + $0x4]]  ;;  %v181_v45 = vadd.f32 %v180_v40, %v177_v37  ;;  %v182_v46 = vadd.f32 %v180_v40, %v178_v38 }
  0x32   :  { %v171_v43 = vadd.f32 %v169_v33, %v165_v35  ;;  %v172_v44 = vadd.f32 %v170_v34, %v166_v36  ;;  %s1006_s20 = sld [smem:[#allocation2 + $0x201]]  ;;  %v185_v47 = vmul.f32 %v184_v41, %v954_v2  ;;  %v186_v48 = vmul.f32 %v184_v41, %v956_v3 }
  0x33   :  { %v191_v49 = vmul.f32 %v190_v42, %v962_v8  ;;  %v192_v50 = vmul.f32 %v190_v42, %v964_v9  ;;  %s1012_s21 = sld [smem:[#allocation2 + $0x202]]  ;;  %v1014_v51 = vmax.f32 %v150_v32, 0.0  ;;  %v198_v53 = vstv %s981_s15 }
  0x34   :  { %v1016_v52 = vmax.f32 %v171_v43, 0.0  ;;  %v202_v54 = vstv %s985_s16  ;;  %s1020_s0 = sld [smem:[#allocation2 + $0x280]]  ;;  %v187_v55 = vadd.f32 %v185_v47, %v181_v45  ;;  %v188_v56 = vadd.f32 %v186_v48, %v182_v46 }
  0x35   :  { %v199_v57 = vmul.f32 %v198_v53, %v948_v0  ;;  %v200_v58 = vmul.f32 %v198_v53, %v950_v1  ;;  %s1024_s22 = sld [smem:[#allocation6 + $0x5]]  ;;  %v1026_v59 = vmax.f32 %v172_v44, 0.0  ;;  %v206_v60 = vstv %s989_s3 }
  0x36   :  { %v212_v61 = vstv %s993_s17  ;;  %v220_v62 = vstv %s997_s18  ;;  %s1031_s2 = sld [smem:[#allocation2 + $0x281]]  ;;  %v193_v63 = vadd.f32 %v191_v49, %v187_v55  ;;  %v194_v4 = vadd.f32 %v192_v50, %v188_v56 }
  0x37   :  { %v203_v5 = vadd.f32 %v202_v54, %v199_v57  ;;  %v204_v6 = vadd.f32 %v202_v54, %v200_v58  ;;  %s1033_s23 = sld [smem:[#allocation2 + $0x282]]  ;;  %v207_v7 = vmul.f32 %v206_v60, %v954_v2  ;;  %v208_v10 = vmul.f32 %v206_v60, %v956_v3 }
  0x38   :  { %v213_v11 = vmul.f32 %v212_v61, %v962_v8  ;;  %v214_v12 = vmul.f32 %v212_v61, %v964_v9  ;;  %s1039_s24 = sld [smem:[#allocation2 + $0x300]]  ;;  %v1041_v13 = vmax.f32 %v193_v63, 0.0  ;;  %v1043_v14 = vmax.f32 %v194_v4, 0.0 }
  0x39   :  { %v221_v15 = vmul.f32 %v220_v62, %v948_v0  ;;  %v222_v16 = vmul.f32 %v220_v62, %v950_v1  ;;  %s1047_s25 = sld [smem:[#allocation6 + $0x6]]  ;;  %v209_v17 = vadd.f32 %v207_v7, %v203_v5  ;;  %v210_v18 = vadd.f32 %v208_v10, %v204_v6 }
  0x3a   :  { %v224_v19 = vstv %s1004_s19  ;;  %v228_v20 = vstv %s1006_s20  ;;  %s1051_s26 = sld [smem:[#allocation2 + $0x301]]  ;;  %v234_v27 = vstv %s1012_s21  ;;  %v242_v28 = vstv %s1020_s0 }
  0x3b   :  { %v225_v21 = vadd.f32 %v224_v19, %v221_v15  ;;  %v226_v22 = vadd.f32 %v224_v19, %v222_v16  ;;  %v229_v23 = vmul.f32 %v228_v20, %v954_v2  ;;  %v230_v24 = vmul.f32 %v228_v20, %v956_v3  ;;  %s1055_s27 = sld [smem:[#allocation2 + $0x302]] }
  0x3c   :  { %v215_v25 = vadd.f32 %v213_v11, %v209_v17  ;;  %v216_v26 = vadd.f32 %v214_v12, %v210_v18  ;;  %s1059_s5 = sld [smem:[#allocation2 + $0x380]]  ;;  %v235_v31 = vmul.f32 %v234_v27, %v962_v8  ;;  %v236_v32 = vmul.f32 %v234_v27, %v964_v9 }
  0x3d   :  { %v231_v29 = vadd.f32 %v229_v23, %v225_v21  ;;  %v232_v30 = vadd.f32 %v230_v24, %v226_v22  ;;  %s1063_s6 = sld [smem:[#allocation6 + $0x7]]  ;;  %v243_v35 = vmul.f32 %v242_v28, %v948_v0  ;;  %v244_v36 = vmul.f32 %v242_v28, %v950_v1 }
  0x3e   :  { %v1065_v33 = vmax.f32 %v215_v25, 0.0  ;;  %v1067_v34 = vmax.f32 %v216_v26, 0.0  ;;  %s1071_s29 = sld [smem:[#allocation2 + $0x381]]  ;;  %v246_v40 = vstv %s1024_s22  ;;  %v250_v41 = vstv %s1031_s2 }
  0x3f   :  { %v237_v37 = vadd.f32 %v235_v31, %v231_v29  ;;  %v238_v38 = vadd.f32 %v236_v32, %v232_v30  ;;  %s1075_s30 = sld [smem:[#allocation2 + $0x382]]  ;;  %v247_v42 = vadd.f32 %v246_v40, %v243_v35  ;;  %v248_v43 = vadd.f32 %v246_v40, %v244_v36 }
  0x40   :  { %v251_v44 = vmul.f32 %v250_v41, %v954_v2  ;;  %v252_v45 = vmul.f32 %v250_v41, %v956_v3  ;;  %s1079_s8 = sld [smem:[#allocation2 + $0x400]]  ;;  %v256_v48 = vstv %s1033_s23  ;;  %v264_v49 = vstv %s1039_s24 }
  0x41   :  { %v1081_v46 = vmax.f32 %v237_v37, 0.0  ;;  %v1083_v47 = vmax.f32 %v238_v38, 0.0  ;;  %v257_v54 = vmul.f32 %v256_v48, %v962_v8  ;;  %v258_v55 = vmul.f32 %v256_v48, %v964_v9  ;;  %s1093_s9 = sld [smem:[#allocation6 + $0x8]] }
  0x42   :  { %v253_v50 = vadd.f32 %v251_v44, %v247_v42  ;;  %v254_v53 = vadd.f32 %v252_v45, %v248_v43  ;;  %v265_v56 = vmul.f32 %v264_v49, %v948_v0  ;;  %v266_v57 = vmul.f32 %v264_v49, %v950_v1  ;;  %s1097_s10 = sld [smem:[#allocation2 + $0x401]] }
  0x43   :  { %v268_v58 = vstv %s1047_s25  ;;  %v272_v60 = vstv %s1051_s26  ;;  %v278_v7 = vstv %s1055_s27  ;;  %v286_v10 = vstv %s1059_s5  ;;  %s1101_s11 = sld [smem:[#allocation2 + $0x402]] }
  0x44   :  { %v259_v61 = vadd.f32 %v257_v54, %v253_v50  ;;  %v260_v62 = vadd.f32 %v258_v55, %v254_v53  ;;  %v273_v63 = vmul.f32 %v272_v60, %v954_v2  ;;  %v274_v4 = vmul.f32 %v272_v60, %v956_v3  ;;  %s1109_s12 = sld [smem:[#allocation2 + $0x480]] }
  0x45   :  { %v269_v5 = vadd.f32 %v268_v58, %v265_v56  ;;  %v270_v6 = vadd.f32 %v268_v58, %v266_v57  ;;  %v279_v15 = vmul.f32 %v278_v7, %v962_v8  ;;  %v280_v16 = vmul.f32 %v278_v7, %v964_v9  ;;  %s1113_s13 = sld [smem:[#allocation6 + $0x9]] }
  0x46   :  { %v1103_v11 = vmax.f32 %v259_v61, 0.0  ;;  %v1105_v12 = vmax.f32 %v260_v62, 0.0  ;;  %v287_v19 = vmul.f32 %v286_v10, %v948_v0  ;;  %v288_v20 = vmul.f32 %v286_v10, %v950_v1  ;;  %s1119_s1 = sld [smem:[#allocation2 + $0x481]] }
  0x47   :  { %v275_v17 = vadd.f32 %v273_v63, %v269_v5  ;;  %v276_v18 = vadd.f32 %v274_v4, %v270_v6  ;;  %v290_v21 = vstv %s1063_s6  ;;  %v294_v22 = vstv %s1071_s29  ;;  %s1121_s14 = sld [smem:[#allocation2 + $0x482]] }
  0x48   :  { %v300_v23 = vstv %s1075_s30  ;;  %v308_v24 = vstv %s1079_s8  ;;  %v291_v27 = vadd.f32 %v290_v21, %v287_v19  ;;  %v292_v28 = vadd.f32 %v290_v21, %v288_v20  ;;  %s1127_s15 = sld [smem:[#allocation8]] }
  0x49   :  { %v281_v25 = vadd.f32 %v279_v15, %v275_v17  ;;  %v282_v26 = vadd.f32 %v280_v16, %v276_v18  ;;  %v295_v29 = vmul.f32 %v294_v22, %v954_v2  ;;  %v296_v30 = vmul.f32 %v294_v22, %v956_v3  ;;  %s1135_s16 = sld [smem:[#allocation9]] }
  0x4a   :  { %v301_v31 = vmul.f32 %v300_v23, %v962_v8  ;;  %v302_v32 = vmul.f32 %v300_v23, %v964_v9  ;;  %v309_v37 = vmul.f32 %v308_v24, %v948_v0  ;;  %v310_v38 = vmul.f32 %v308_v24, %v950_v1  ;;  %s1139_s3 = sld [smem:[#allocation8 + $0x1]] }
  0x4b   :  { %v1129_v35 = vmax.f32 %v281_v25, 0.0  ;;  %v1131_v36 = vmax.f32 %v282_v26, 0.0  ;;  %v297_v40 = vadd.f32 %v295_v29, %v291_v27  ;;  %v298_v41 = vadd.f32 %v296_v30, %v292_v28  ;;  %s1143_s17 = sld [smem:[#allocation8 + $0x2]] }
  0x4c   :  { %v312_v42 = vstv %s1093_s9  ;;  %v316_v43 = vstv %s1097_s10  ;;  %v322_v54 = vstv %s1101_s11  ;;  %v330_v55 = vstv %s1109_s12  ;;  %s1147_s18 = sld [smem:[#allocation8 + $0x3]] }
  0x4d   :  { %v313_v44 = vadd.f32 %v312_v42, %v309_v37  ;;  %v314_v45 = vadd.f32 %v312_v42, %v310_v38  ;;  %v317_v48 = vmul.f32 %v316_v43, %v954_v2  ;;  %v318_v49 = vmul.f32 %v316_v43, %v956_v3  ;;  %s1151_s19 = sld [smem:[#allocation8 + $0x4]] }
  0x4e   :  { %v303_v50 = vadd.f32 %v301_v31, %v297_v40  ;;  %v304_v53 = vadd.f32 %v302_v32, %v298_v41  ;;  %v323_v58 = vmul.f32 %v322_v54, %v962_v8  ;;  %v324_v60 = vmul.f32 %v322_v54, %v964_v9  ;;  %s1159_s20 = sld [smem:[#allocation8 + $0x5]] }
  0x4f   :  { %v319_v56 = vadd.f32 %v317_v48, %v313_v44  ;;  %v320_v57 = vadd.f32 %v318_v49, %v314_v45  ;;  %v331_v63 = vmul.f32 %v330_v55, %v948_v0  ;;  %v332_v4 = vmul.f32 %v330_v55, %v950_v1  ;;  %s1163_s21 = sld [smem:[#allocation8 + $0x6]] }
  0x50   :  { %v1153_v61 = vmax.f32 %v303_v50, 0.0  ;;  %v1155_v62 = vmax.f32 %v304_v53, 0.0  ;;  %v334_v7 = vstv %s1113_s13  ;;  %v338_v10 = vstv %s1119_s1  ;;  %s1167_s0 = sld [smem:[#allocation8 + $0x7]] }
  0x51   :  { %v325_v5 = vadd.f32 %v323_v58, %v319_v56  ;;  %v326_v6 = vadd.f32 %v324_v60, %v320_v57  ;;  %v335_v15 = vadd.f32 %v334_v7, %v331_v63  ;;  %v336_v16 = vadd.f32 %v334_v7, %v332_v4  ;;  %s1175_s22 = sld [smem:[#allocation8 + $0x8]] }
  0x52   :  { %v339_v17 = vmul.f32 %v338_v10, %v954_v2  ;;  %v340_v18 = vmul.f32 %v338_v10, %v956_v3  ;;  %v344_v19 = vstv %s1121_s14  ;;  %v352_v20 = vstv %s1127_s15  ;;  %s1179_s2 = sld [smem:[#allocation8 + $0x9]] }
  0x53   :  { %v1169_v0 = vmax.f32 %v325_v5, 0.0  ;;  %v1171_v1 = vmax.f32 %v326_v6, 0.0  ;;  %v345_v23 = vmul.f32 %v344_v19, %v962_v8  ;;  %v346_v2 = vmul.f32 %v344_v19, %v964_v9  ;;  %s1185_s23 = sld [smem:[#allocation8 + $0x80]] }
  0x54   :  { %v341_v21 = vadd.f32 %v339_v17, %v335_v15  ;;  %v342_v22 = vadd.f32 %v340_v18, %v336_v16  ;;  %v353_v3 = vmul.f32 %v352_v20, %v999_v39  ;;  %v354_v24 = vmul.f32 %v352_v20, %v1014_v51  ;;  %s1189_s24 = sld [smem:[#allocation9 + $0x1]] }
  0x55   :  { %v356_v25 = vstv %s1135_s16  ;;  %v360_v26 = vstv %s1139_s3  ;;  %v366_v31 = vstv %s1143_s17  ;;  %v372_v32 = vstv %s1147_s18  ;;  %s1199_s25 = sld [smem:[#allocation8 + $0x81]] }
  0x56   :  { %v347_v27 = vadd.f32 %v345_v23, %v341_v21  ;;  %v348_v28 = vadd.f32 %v346_v2, %v342_v22  ;;  %v361_v29 = vmul.f32 %v360_v26, %v1016_v52  ;;  %v362_v30 = vmul.f32 %v360_v26, %v1026_v59  ;;  %s1203_s26 = sld [smem:[#allocation8 + $0x82]] }
  0x57   :  { %v357_v8 = vadd.f32 %v356_v25, %v353_v3  ;;  %v358_v9 = vadd.f32 %v356_v25, %v354_v24  ;;  %v367_v40 = vmul.f32 %v366_v31, %v1041_v13  ;;  %v368_v41 = vmul.f32 %v366_v31, %v1043_v14  ;;  %s1211_s27 = sld [smem:[#allocation8 + $0x83]] }
  0x58   :  { %v1193_v37 = vmax.f32 %v347_v27, 0.0  ;;  %v1195_v38 = vmax.f32 %v348_v28, 0.0  ;;  %v373_v44 = vmul.f32 %v372_v32, %v1065_v33  ;;  %v374_v45 = vmul.f32 %v372_v32, %v1067_v34  ;;  %s1217_s5 = sld [smem:[#allocation8 + $0x84]] }
  0x59   :  { %v363_v42 = vadd.f32 %v361_v29, %v357_v8  ;;  %v364_v43 = vadd.f32 %v362_v30, %v358_v9  ;;  %v378_v48 = vstv %s1151_s19  ;;  %v384_v49 = vstv %s1159_s20  ;;  %s1225_s6 = sld [smem:[#allocation8 + $0x85]] }
  0x5a   :  { %v390_v50 = vstv %s1163_s21  ;;  %v396_v53 = vstv %s1167_s0  ;;  %v379_v56 = vmul.f32 %v378_v48, %v1081_v46  ;;  %v380_v57 = vmul.f32 %v378_v48, %v1083_v47  ;;  %s1229_s29 = sld [smem:[#allocation8 + $0x86]] }
  0x5b   :  { %v369_v54 = vadd.f32 %v367_v40, %v363_v42  ;;  %v370_v55 = vadd.f32 %v368_v41, %v364_v43  ;;  %v385_v58 = vmul.f32 %v384_v49, %v1103_v11  ;;  %v386_v60 = vmul.f32 %v384_v49, %v1105_v12  ;;  %s1235_s30 = sld [smem:[#allocation8 + $0x87]] }
  0x5c   :  { %v391_v63 = vmul.f32 %v390_v50, %v1129_v35  ;;  %v392_v4 = vmul.f32 %v390_v50, %v1131_v36  ;;  %v397_v7 = vmul.f32 %v396_v53, %v1153_v61  ;;  %v398_v10 = vmul.f32 %v396_v53, %v1155_v62  ;;  %s1239_s8 = sld [smem:[#allocation8 + $0x88]] }
  0x5d   :  { %v375_v5 = vadd.f32 %v373_v44, %v369_v54  ;;  %v376_v6 = vadd.f32 %v374_v45, %v370_v55  ;;  %v402_v15 = vstv %s1175_s22  ;;  %v408_v16 = vstv %s1179_s2  ;;  %s1243_s9 = sld [smem:[#allocation8 + $0x89]] }
  0x5e   :  { %v416_v17 = vstv %s1185_s23  ;;  %v420_v18 = vstv %s1189_s24  ;;  %v403_v21 = vmul.f32 %v402_v15, %v1169_v0  ;;  %v404_v22 = vmul.f32 %v402_v15, %v1171_v1  ;;  %s1247_s10 = sld [smem:[#allocation8 + $0x100]] }
  0x5f   :  { %v381_v19 = vadd.f32 %v379_v56, %v375_v5  ;;  %v382_v20 = vadd.f32 %v380_v57, %v376_v6  ;;  %v409_v23 = vmul.f32 %v408_v16, %v1193_v37  ;;  %v410_v2 = vmul.f32 %v408_v16, %v1195_v38  ;;  %s1251_s11 = sld [smem:[#allocation9 + $0x2]] }
  0x60   :  { %v417_v3 = vmul.f32 %v416_v17, %v999_v39  ;;  %v418_v24 = vmul.f32 %v416_v17, %v1014_v51  ;;  %v424_v27 = vstv %s1199_s25  ;;  %v430_v28 = vstv %s1203_s26  ;;  %s1255_s12 = sld [smem:[#allocation8 + $0x101]]  ;;  %s883_s25 = smov [#allocation15]  }
  0x61   :  { %v387_v25 = vadd.f32 %v385_v58, %v381_v19  ;;  %v388_v26 = vadd.f32 %v386_v60, %v382_v20  ;;  %v425_v8 = vmul.f32 %v424_v27, %v1016_v52  ;;  %v426_v9 = vmul.f32 %v424_v27, %v1026_v59  ;;  %s1261_s13 = sld [smem:[#allocation8 + $0x102]]  ;;  %s623_s26 = sshll.u32 %s883_s25, 4  ;;  %s624_s26 = int_to_ptr.vmem [resolvable:$true] %s623_s26 }
  0x62   :  { %v421_v29 = vadd.f32 %v420_v18, %v417_v3  ;;  %v422_v30 = vadd.f32 %v420_v18, %v418_v24  ;;  %v431_v40 = vmul.f32 %v430_v28, %v1041_v13  ;;  %v432_v41 = vmul.f32 %v430_v28, %v1043_v14  ;;  %s1265_s1 = sld [smem:[#allocation8 + $0x103]] }
  0x63   :  { %v393_v31 = vadd.f32 %v391_v63, %v387_v25  ;;  %v394_v32 = vadd.f32 %v392_v4, %v388_v26  ;;  %v436_v44 = vstv %s1211_s27  ;;  %v442_v45 = vstv %s1217_s5  ;;  %s1271_s14 = sld [smem:[#allocation8 + $0x104]] }
  0x64   :  { %v427_v42 = vadd.f32 %v425_v8, %v421_v29  ;;  %v428_v43 = vadd.f32 %v426_v9, %v422_v30  ;;  %v437_v50 = vmul.f32 %v436_v44, %v1065_v33  ;;  %v438_v53 = vmul.f32 %v436_v44, %v1067_v34  ;;  %s1279_s15 = sld [smem:[#allocation8 + $0x105]] }
  0x65   :  { %v399_v48 = vadd.f32 %v397_v7, %v393_v31  ;;  %v400_v49 = vadd.f32 %v398_v10, %v394_v32  ;;  %v443_v56 = vmul.f32 %v442_v45, %v1081_v46  ;;  %v444_v57 = vmul.f32 %v442_v45, %v1083_v47  ;;  %s1287_s16 = sld [smem:[#allocation8 + $0x106]] }
  0x66   :  { %v433_v54 = vadd.f32 %v431_v40, %v427_v42  ;;  %v434_v55 = vadd.f32 %v432_v41, %v428_v43  ;;  %v448_v63 = vstv %s1225_s6  ;;  %v454_v4 = vstv %s1229_s29  ;;  %s1291_s3 = sld [smem:[#allocation8 + $0x107]]  ;;  %s625_s6 = sshll.u32 %s1364_s7, 4  ;;  %s626_s6 = int_to_ptr.hbm [resolvable:$true] %s625_s6 }
  0x67   :  { %v405_v58 = vadd.f32 %v403_v21, %v399_v48  ;;  %v406_v60 = vadd.f32 %v404_v22, %v400_v49  ;;  %v449_v7 = vmul.f32 %v448_v63, %v1103_v11  ;;  %v450_v10 = vmul.f32 %v448_v63, %v1105_v12  ;;  %s1297_s17 = sld [smem:[#allocation8 + $0x108]] }
  0x68   :  { %v439_v5 = vadd.f32 %v437_v50, %v433_v54  ;;  %v440_v6 = vadd.f32 %v438_v53, %v434_v55  ;;  %v455_v15 = vmul.f32 %v454_v4, %v1129_v35  ;;  %v456_v16 = vmul.f32 %v454_v4, %v1131_v36  ;;  %s1301_s18 = sld [smem:[#allocation8 + $0x109]] }
  0x69   :  { %v460_v19 = vstv %s1235_s30  ;;  %v466_v20 = vstv %s1239_s8  ;;  %v1273_v21 = vadd.f32 %v409_v23, %v405_v58  ;;  %v1275_v22 = vadd.f32 %v410_v2, %v406_v60  ;;  %s1305_s19 = sld [smem:[#allocation11]] }
  0x6a   :  { %v445_v17 = vadd.f32 %v443_v56, %v439_v5  ;;  %v446_v18 = vadd.f32 %v444_v57, %v440_v6  ;;  %v461_v3 = vmul.f32 %v460_v19, %v1153_v61  ;;  %v462_v24 = vmul.f32 %v460_v19, %v1155_v62  ;;  %s1309_s20 = sld [smem:[#allocation12]] }
  0x6b   :  { %v467_v27 = vmul.f32 %v466_v20, %v1169_v0  ;;  %v468_v28 = vmul.f32 %v466_v20, %v1171_v1  ;;  %v472_v29 = vstv %s1243_s9  ;;  %v480_v30 = vstv %s1247_s10  ;;  %s1313_s21 = sld [smem:[#allocation11 + $0x1]] }
  0x6c   :  { %v451_v25 = vadd.f32 %v449_v7, %v445_v17  ;;  %v452_v26 = vadd.f32 %v450_v10, %v446_v18  ;;  %v484_v8 = vstv %s1251_s11  ;;  %v488_v23 = vstv %s1255_s12  ;;  %s1315_s0 = sld [smem:[#allocation11 + $0x80]] }
  0x6d   :  { %v473_v31 = vmul.f32 %v472_v29, %v1193_v37  ;;  %v474_v32 = vmul.f32 %v472_v29, %v1195_v38  ;;  %v481_v40 = vmul.f32 %v480_v30, %v999_v39  ;;  %v482_v41 = vmul.f32 %v480_v30, %v1014_v51  ;;  %s1319_s22 = sld [smem:[#allocation12 + $0x1]] }
  0x6e   :  { %v457_v2 = vadd.f32 %v455_v15, %v451_v25  ;;  %v458_v9 = vadd.f32 %v456_v16, %v452_v26  ;;  %v489_v42 = vmul.f32 %v488_v23, %v1016_v52  ;;  %v490_v43 = vmul.f32 %v488_v23, %v1026_v59  ;;  %s1327_s2 = sld [smem:[#allocation11 + $0x81]] }
  0x6f   :  { %v494_v48 = vstv %s1261_s13  ;;  %v500_v49 = vstv %s1265_s1  ;;  %v485_v50 = vadd.f32 %v484_v8, %v481_v40  ;;  %v486_v53 = vadd.f32 %v484_v8, %v482_v41  ;;  %s1337_s23 = sld [smem:[#allocation11 + $0x2]] }
  0x70   :  { %v463_v44 = vadd.f32 %v461_v3, %v457_v2  ;;  %v464_v45 = vadd.f32 %v462_v24, %v458_v9  ;;  %v495_v39 = vmul.f32 %v494_v48, %v1041_v13  ;;  %v496_v51 = vmul.f32 %v494_v48, %v1043_v14  ;;  %s1343_s24 = sld [smem:[#allocation11 + $0x82]] }
  0x71   :  { %v501_v54 = vmul.f32 %v500_v49, %v1065_v33  ;;  %v502_v55 = vmul.f32 %v500_v49, %v1067_v34  ;;  %v491_v56 = vadd.f32 %v489_v42, %v485_v50  ;;  %v492_v57 = vadd.f32 %v490_v43, %v486_v53 }
  0x72   :  { %v469_v52 = vadd.f32 %v467_v27, %v463_v44  ;;  %v470_v59 = vadd.f32 %v468_v28, %v464_v45  ;;  %v506_v58 = vstv %s1271_s14  ;;  %v512_v60 = vstv %s1279_s15 }
  0x73   :  { %v497_v63 = vadd.f32 %v495_v39, %v491_v56  ;;  %v498_v4 = vadd.f32 %v496_v51, %v492_v57  ;;  %v507_v33 = vmul.f32 %v506_v58, %v1081_v46  ;;  %v508_v34 = vmul.f32 %v506_v58, %v1083_v47 }
  0x74   :  { %v475_v13 = vadd.f32 %v473_v31, %v469_v52  ;;  %v476_v14 = vadd.f32 %v474_v32, %v470_v59  ;;  %v413_v5 = vmax.f32 %v1273_v21, 0.0  ;;  %v414_v6 = vmax.f32 %v1275_v22, 0.0 }
  0x75   :  { %v513_v7 = vmul.f32 %v512_v60, %v1103_v11  ;;  %v518_v10 = vstv %s1287_s16  ;;  %v503_v15 = vadd.f32 %v501_v54, %v497_v63  ;;  %v504_v16 = vadd.f32 %v502_v55, %v498_v4 }
  0x76   :  { %v514_v17 = vmul.f32 %v512_v60, %v1105_v12  ;;  %v524_v46 = vstv %s1291_s3  ;;  %v477_v47 = vmax.f32 %v475_v13, 0.0  ;;  %v478_v18 = vmax.f32 %v476_v14, 0.0 }
  0x77   :  { %v519_v19 = vmul.f32 %v518_v10, %v1129_v35  ;;  %v520_v20 = vmul.f32 %v518_v10, %v1131_v36  ;;  %v509_v21 = vadd.f32 %v507_v33, %v503_v15  ;;  %v510_v22 = vadd.f32 %v508_v34, %v504_v16 }
  0x78   :  { %v530_v11 = vstv %s1297_s17  ;;  %v536_v3 = vstv %s1301_s18  ;;  %v525_v24 = vmul.f32 %v524_v46, %v1153_v61  ;;  %v526_v25 = vmul.f32 %v524_v46, %v1155_v62 }
  0x79   :  { %v544_v12 = vstv %s1305_s19  ;;  %v548_v26 = vstv %s1309_s20  ;;  %v515_v27 = vadd.f32 %v513_v7, %v509_v21  ;;  %v516_v28 = vadd.f32 %v514_v17, %v510_v22 }
  0x7a   :  { %v545_v29 = vmul.f32 %v544_v12, %v413_v5  ;;  %v546_v30 = vmul.f32 %v544_v12, %v414_v6  ;;  %v531_v35 = vmul.f32 %v530_v11, %v1169_v0  ;;  %v532_v36 = vmul.f32 %v530_v11, %v1171_v1 }
  0x7b   :  { %v537_v8 = vmul.f32 %v536_v3, %v1193_v37  ;;  %v564_v61 = vstv %s1315_s0  ;;  %v521_v62 = vadd.f32 %v519_v19, %v515_v27  ;;  %v522_v23 = vadd.f32 %v520_v20, %v516_v28 }
  0x7c   :  { %v552_v2 = vstv %s1313_s21  ;;  %v568_v9 = vstv %s1319_s22  ;;  %v538_v31 = vmul.f32 %v536_v3, %v1195_v38  ;;  %v549_v32 = vadd.f32 %v548_v26, %v545_v29 }
  0x7d   :  { %v565_v40 = vmul.f32 %v564_v61, %v413_v5  ;;  %v566_v41 = vmul.f32 %v564_v61, %v414_v6  ;;  %v527_v42 = vadd.f32 %v525_v24, %v521_v62  ;;  %v528_v0 = vadd.f32 %v526_v25, %v522_v23 }
  0x7e   :  { %v550_v43 = vadd.f32 %v548_v26, %v546_v30  ;;  %v572_v1 = vstv %s1327_s2  ;;  %v553_v44 = vmul.f32 %v552_v2, %v477_v47  ;;  %v554_v37 = vmul.f32 %v552_v2, %v478_v18 }
  0x7f   :  { %v569_v45 = vadd.f32 %v568_v9, %v565_v40  ;;  %v570_v48 = vadd.f32 %v568_v9, %v566_v41  ;;  %v533_v49 = vadd.f32 %v531_v35, %v527_v42  ;;  %v534_v50 = vadd.f32 %v532_v36, %v528_v0 }
  0x80   :  { %v573_v53 = vmul.f32 %v572_v1, %v477_v47  ;;  %v574_v39 = vmul.f32 %v572_v1, %v478_v18  ;;  %v555_v38 = vadd.f32 %v553_v44, %v549_v32  ;;  %v556_v59 = vadd.f32 %v554_v37, %v550_v43 }
  0x81   :  { %v539_v51 = vadd.f32 %v537_v8, %v533_v49  ;;  %v540_v52 = vadd.f32 %v538_v31, %v534_v50  ;;  %v558_v54 = vstv %s1337_s23  ;;  %v578_v55 = vstv %s1343_s24 }
  0x82   :  { %v575_v58 = vadd.f32 %v573_v53, %v569_v45  ;;  %v576_v60 = vadd.f32 %v574_v39, %v570_v48 }
  0x83   :  { %v541_v56 = vmax.f32 %v539_v51, 0.0  ;;  %v542_v57 = vmax.f32 %v540_v52, 0.0 }
  0x85   :  { %v559_v13 = vmul.f32 %v558_v54, %v541_v56  ;;  %v560_v14 = vmul.f32 %v558_v54, %v542_v57  ;;  %v579_v63 = vmul.f32 %v578_v55, %v541_v56  ;;  %v580_v4 = vmul.f32 %v578_v55, %v542_v57 }
  0x87   :  { %v561_v33 = vadd.f32 %v559_v13, %v555_v38  ;;  %v562_v34 = vadd.f32 %v560_v14, %v556_v59  ;;  %v581_v5 = vadd.f32 %v579_v63, %v575_v58  ;;  %v582_v6 = vadd.f32 %v580_v4, %v576_v60 }
  0x89   :  { %v583_v7 = vsub.f32 %v561_v33, %v581_v5  ;;  %v584_v10 = vsub.f32 %v562_v34, %v582_v6 }
  0x8b   :  { %v585_v15 = vand.u32 2147483647, %v583_v7  ;;  %v586_v16 = vand.u32 2147483647, %v584_v10  ;;  %vm605_vm0 = vcmp.ge.f32.partialorder %v583_v7, 0.0  ;;  %vm606_vm1 = vcmp.ge.f32.partialorder %v584_v10, 0.0 }
  0x8d   :  { %v587_v17 = vsub.f32 0.0, %v585_v15  ;;  %v588_v46 = vsub.f32 0.0, %v586_v16 }
  0x8f   :  { %v589_v47 = vmul.f32 1.442695, %v587_v17  ;;  %v591_v18 = vmul.f32 1.442695, %v588_v46 }
  0x91   :  { %732 = vpow2.f32 %v589_v47 }
  0x92   :  { %734 = vpow2.f32 %v591_v18 }
  0x97   :  { %v733_v19 = vpop.eup %732 }
  0x98   :  { %v735_v20 = vpop.eup %734  ;;  %v593_v21 = vadd.f32 1.0, %v733_v19 }
  0x99   :  { %v594_v22 = vadd.f32 1.0, %v735_v20 }
  0x9a   :  { %736 = vrcp.f32 %v593_v21 }
  0x9b   :  { %738 = vrcp.f32 %v594_v22 }
  0xa0   :  { %v737_v11 = vpop.eup %736 }
  0xa1   :  { %v739_v3 = vpop.eup %738  ;;  %v597_v24 = vmul.f32 %v737_v11, %v593_v21 }
  0xa2   :  { %v598_v25 = vmul.f32 %v739_v3, %v594_v22 }
  0xa3   :  { %v599_v12 = vsub.f32 2.0, %v597_v24 }
  0xa4   :  { %v600_v26 = vsub.f32 2.0, %v598_v25 }
  0xa5   :  { %v601_v27 = vmul.f32 %v737_v11, %v599_v12 }
  0xa6   :  { %v602_v28 = vmul.f32 %v739_v3, %v600_v26 }
  0xa7   :  { %v603_v29 = vmul.f32 %v733_v19, %v601_v27 }
  0xa8   :  { %v604_v30 = vmul.f32 %v735_v20, %v602_v28 }
  0xa9   :  { %v607_v35 = vsel %vm605_vm0, %v601_v27, %v603_v29  ;;  %v613_v36 = vsel %vm605_vm0, %v603_v29, %v601_v27 }
  0xaa   :  { %v608_v8 = vsel %vm606_vm1, %v602_v28, %v604_v30  ;;  %611 = vst [vmem:[#allocation15] sm:$0xff] %v607_v35  ;;  %v614_v61 = vsel %vm606_vm1, %v604_v30, %v602_v28 }
  0xab   :  { %612 = vst [vmem:[#allocation15 + $0x8] sm:$0xff] %v608_v8 }
  0xac   :  { %617 = vst [vmem:[#allocation15 + $0x10] sm:$0xff] %v613_v36 }
  0xad   :  { %618 = vst [vmem:[#allocation15 + $0x18] sm:$0xff] %v614_v61 }
  0xae   :  { %631 = dma.vmem_to_hbm [thread:$0]  %s624_s26, 512, %s626_s6, [#allocation4], %s881_s28, %s881_s28, %s882_s4  }
  0xaf   :  { %870 = dma.done.wait [#allocation4], 512  }
  0xb0   :  { %871 = vsyncadd [#allocation4], 4294966784 }
  0xb1   :  { %636 = vsyncpa [#allocation3], 1 }
  0xb2   :  { %637 = vsyncpa [#allocation4], 1 }
  0xb3   :  { %638 = vsyncpa [#allocation5], 1 }
  0xb4   :  { %639 = vsyncpa [#allocation7], 1 }
  0xb5   :  { %640 = vsyncpa [#allocation10], 1 }
  0xb6   :  { %641 = vsyncpa [#allocation13], 1 }

</bundles_post_ra>
